<compile_context>
chip_gen: v6e
topology: v6e:2x2x1
jax: 0.10.0
libtpu: 0.0.40
codegen_flags: <defaults>
</compile_context>

<pallas_src>
import jax
import jax.numpy as jnp
from jax.experimental import pallas as pl
from jax.experimental.pallas import tpu as pltpu

LANE = 128  # lane-dense padded width for the final layer output


def _round_up(x, m):
    return (x + m - 1) // m * m


def dense_block_kernel(x_ref, w1_ref, b1_ref, w2_ref, b2_ref, w3_ref, b3_ref,
                       o_ref):
    # fc1 + relu (bf16 operands, f32 accumulation)
    h1 = jnp.dot(x_ref[...], w1_ref[...],
                 preferred_element_type=jnp.float32) + b1_ref[...]
    h1 = jnp.maximum(h1, 0.0).astype(w2_ref.dtype)
    # fc2 + relu
    h2 = jnp.dot(h1, w2_ref[...],
                 preferred_element_type=jnp.float32) + b2_ref[...]
    h2 = jnp.maximum(h2, 0.0).astype(w3_ref.dtype)
    # fc3 (no activation) -> lane-dense (TB, 128) store
    out = jnp.dot(h2, w3_ref[...],
                  preferred_element_type=jnp.float32) + b3_ref[...]
    o_ref[...] = out.astype(o_ref.dtype)


def dense_block(x, params, *, tb=None):
    """Fused 3-layer MLP. x: (B, d_in) f32 -> (B, 3) f32."""
    w1, b1, w2, b2, w3, b3 = params
    B, d_in = x.shape
    d_hid = w1.shape[1]
    d_out = w3.shape[1]  # 3

    # Batch tile: 128 for large batches (sweet spot 128-256), otherwise the
    # whole (8-aligned) batch in one grid step.
    if tb is None:
        tb = 128 if B >= 128 else _round_up(B, 8)
    b_pad = _round_up(B, tb)
    if b_pad != B:
        x = jnp.pad(x, ((0, b_pad - B), (0, 0)))

    # bf16 matmul operands (f32 accumulation happens inside the kernel).
    x_bf = x.astype(jnp.bfloat16)
    w1_bf = w1.astype(jnp.bfloat16)
    w2_bf = w2.astype(jnp.bfloat16)
    # Pad the final layer to 128 output columns so the output store is
    # lane-dense; padded columns are zero and sliced off below.
    w3_p = jnp.zeros((d_hid, LANE), jnp.bfloat16).at[:, :d_out].set(
        w3.astype(jnp.bfloat16))
    b3_p = jnp.zeros((1, LANE), jnp.float32).at[:, :d_out].set(b3)

    grid = (b_pad // tb,)

    def resident(shape):
        # Weights/biases: same block every grid step -> stays VMEM-resident.
        return pl.BlockSpec(shape, lambda i: (0, 0))

    out_padded = pl.pallas_call(
        dense_block_kernel,
        out_shape=jax.ShapeDtypeStruct((b_pad, LANE), jnp.float32),
        grid=grid,
        in_specs=[
            pl.BlockSpec((tb, d_in), lambda i: (i, 0)),   # x: batch-tiled
            resident((d_in, d_hid)),                      # w1
            resident((1, d_hid)),                         # b1
            resident((d_hid, d_hid)),                     # w2
            resident((1, d_hid)),                         # b2
            resident((d_hid, LANE)),                      # w3 (padded)
            resident((1, LANE)),                          # b3 (padded)
        ],
        out_specs=pl.BlockSpec((tb, LANE), lambda i: (i, 0)),
        compiler_params=pltpu.CompilerParams(
            dimension_semantics=("parallel",)),
    )(x_bf, w1_bf, b1, w2_bf, b2, w3_p, b3_p)

    return out_padded[:B, :d_out]


def init_params(key, in_features, out_features, r):
    """Deterministic init mirroring the PyTorch module's layer shapes.

    fc1: Linear(round(in_features/r*2), round(out_features/r*2))
    fc2: Linear(round(out_features/r*2), round(out_features/r*2))
    fc3: Linear(round(out_features/r*2), 3)
    Weights are stored transposed (in, out) so the kernel does x @ W + b.
    """
    d_in = int(round(in_features / r * 2))
    d_hid = int(round(out_features / r * 2))
    d_out = 3
    k1, k2, k3, k4, k5, k6 = jax.random.split(key, 6)

    def uinit(k, shape, fan_in):
        bound = 1.0 / jnp.sqrt(fan_in)
        return jax.random.uniform(k, shape, jnp.float32, -bound, bound)

    w1 = uinit(k1, (d_in, d_hid), d_in)
    b1 = uinit(k2, (1, d_hid), d_in)
    w2 = uinit(k3, (d_hid, d_hid), d_hid)
    b2 = uinit(k4, (1, d_hid), d_hid)
    w3 = uinit(k5, (d_hid, d_out), d_hid)
    b3 = uinit(k6, (1, d_out), d_hid)
    return (w1, b1, w2, b2, w3, b3), d_in


def reference_matched(x, params):
    """JAX reference with the same bf16-operand / f32-accumulate numerics."""
    w1, b1, w2, b2, w3, b3 = params
    xb = x.astype(jnp.bfloat16)
    h1 = jnp.dot(xb, w1.astype(jnp.bfloat16),
                 preferred_element_type=jnp.float32) + b1
    h1 = jnp.maximum(h1, 0.0).astype(jnp.bfloat16)
    h2 = jnp.dot(h1, w2.astype(jnp.bfloat16),
                 preferred_element_type=jnp.float32) + b2
    h2 = jnp.maximum(h2, 0.0).astype(jnp.bfloat16)
    return jnp.dot(h2, w3.astype(jnp.bfloat16),
                   preferred_element_type=jnp.float32) + b3


if __name__ == "__main__":
    key = jax.random.PRNGKey(0)
    k_param, k_x = jax.random.split(key)

    # Module hyperparameters -> fc1: 32->32, fc2: 32->32, fc3: 32->3
    in_features, out_features, r = 256, 256, 16
    params, d_in = init_params(k_param, in_features, out_features, r)

    B = 8
    x = jax.random.normal(k_x, (B, d_in), jnp.float32)

    out = dense_block(x, params)
    out = jax.block_until_ready(out)

    ref = reference_matched(x, params)
    assert out.shape == (B, 3), out.shape
    assert jnp.allclose(out, ref, atol=1e-3, rtol=1e-3), "mismatch vs reference"
    print("KERNEL_OK")
</pallas_src>

<mosaic_0001>
module attributes {stable_mosaic.version = 11 : i64} {
  func.func @dense_block_kernel(%arg0: i32, %arg1: memref<8x32xbf16, #tpu.memory_space<vmem>>, %arg2: memref<32x32xbf16, #tpu.memory_space<vmem>>, %arg3: memref<1x32xf32, #tpu.memory_space<vmem>>, %arg4: memref<32x32xbf16, #tpu.memory_space<vmem>>, %arg5: memref<1x32xf32, #tpu.memory_space<vmem>>, %arg6: memref<32x128xbf16, #tpu.memory_space<vmem>>, %arg7: memref<1x128xf32, #tpu.memory_space<vmem>>, %arg8: memref<8x128xf32, #tpu.memory_space<vmem>>) attributes {dimension_semantics = [#tpu.dimension_semantics<parallel>], iteration_bounds = array<i64: 1>, scalar_prefetch = 0 : i64, scratch_operands = 0 : i64, tpu.core_type = #tpu.core_type<tc>, window_params = [{transform_indices = @transform_0, window_bounds = array<i64: 8, 32>}, {pipeline_mode = #tpu.pipeline_mode<synchronous>, transform_indices = @transform_1, window_bounds = array<i64: 32, 32>}, {pipeline_mode = #tpu.pipeline_mode<synchronous>, transform_indices = @transform_2, window_bounds = array<i64: 1, 32>}, {pipeline_mode = #tpu.pipeline_mode<synchronous>, transform_indices = @transform_3, window_bounds = array<i64: 32, 32>}, {pipeline_mode = #tpu.pipeline_mode<synchronous>, transform_indices = @transform_4, window_bounds = array<i64: 1, 32>}, {pipeline_mode = #tpu.pipeline_mode<synchronous>, transform_indices = @transform_5, window_bounds = array<i64: 32, 128>}, {pipeline_mode = #tpu.pipeline_mode<synchronous>, transform_indices = @transform_6, window_bounds = array<i64: 1, 128>}, {transform_indices = @transform_7, window_bounds = array<i64: 8, 128>}]} {
    %c0 = arith.constant 0 : index
    %c0_0 = arith.constant 0 : index
    %0 = vector.load %arg1[%c0, %c0_0] : memref<8x32xbf16, #tpu.memory_space<vmem>>, vector<8x32xbf16>
    %c0_1 = arith.constant 0 : index
    %c0_2 = arith.constant 0 : index
    %1 = vector.load %arg2[%c0_1, %c0_2] : memref<32x32xbf16, #tpu.memory_space<vmem>>, vector<32x32xbf16>
    %cst = arith.constant dense<0.000000e+00> : vector<8x32xf32>
    %2 = tpu.matmul %0, %1, %cst {dimension_numbers = #tpu.dot_dimension_numbers<[1], [0], [0], [1], [0, 0, 1, 1], [], []>} : vector<8x32xbf16>, vector<32x32xbf16>, vector<8x32xf32> -> vector<8x32xf32>
    %c0_3 = arith.constant 0 : index
    %c0_4 = arith.constant 0 : index
    %3 = vector.load %arg3[%c0_3, %c0_4] : memref<1x32xf32, #tpu.memory_space<vmem>>, vector<1x32xf32>
    %4 = vector.broadcast %3 : vector<1x32xf32> to vector<8x32xf32>
    %5 = arith.addf %2, %4 : vector<8x32xf32>
    %cst_5 = arith.constant 0.000000e+00 : f32
    %6 = vector.broadcast %cst_5 : f32 to vector<8x32xf32>
    %7 = arith.maximumf %5, %6 : vector<8x32xf32>
    %8 = arith.truncf %7 : vector<8x32xf32> to vector<8x32xbf16>
    %c0_6 = arith.constant 0 : index
    %c0_7 = arith.constant 0 : index
    %9 = vector.load %arg4[%c0_6, %c0_7] : memref<32x32xbf16, #tpu.memory_space<vmem>>, vector<32x32xbf16>
    %cst_8 = arith.constant dense<0.000000e+00> : vector<8x32xf32>
    %10 = tpu.matmul %8, %9, %cst_8 {dimension_numbers = #tpu.dot_dimension_numbers<[1], [0], [0], [1], [0, 0, 1, 1], [], []>} : vector<8x32xbf16>, vector<32x32xbf16>, vector<8x32xf32> -> vector<8x32xf32>
    %c0_9 = arith.constant 0 : index
    %c0_10 = arith.constant 0 : index
    %11 = vector.load %arg5[%c0_9, %c0_10] : memref<1x32xf32, #tpu.memory_space<vmem>>, vector<1x32xf32>
    %12 = vector.broadcast %11 : vector<1x32xf32> to vector<8x32xf32>
    %13 = arith.addf %10, %12 : vector<8x32xf32>
    %cst_11 = arith.constant 0.000000e+00 : f32
    %14 = vector.broadcast %cst_11 : f32 to vector<8x32xf32>
    %15 = arith.maximumf %13, %14 : vector<8x32xf32>
    %16 = arith.truncf %15 : vector<8x32xf32> to vector<8x32xbf16>
    %c0_12 = arith.constant 0 : index
    %c0_13 = arith.constant 0 : index
    %17 = vector.load %arg6[%c0_12, %c0_13] : memref<32x128xbf16, #tpu.memory_space<vmem>>, vector<32x128xbf16>
    %cst_14 = arith.constant dense<0.000000e+00> : vector<8x128xf32>
    %18 = tpu.matmul %16, %17, %cst_14 {dimension_numbers = #tpu.dot_dimension_numbers<[1], [0], [0], [1], [0, 0, 1, 1], [], []>} : vector<8x32xbf16>, vector<32x128xbf16>, vector<8x128xf32> -> vector<8x128xf32>
    %c0_15 = arith.constant 0 : index
    %c0_16 = arith.constant 0 : index
    %19 = vector.load %arg7[%c0_15, %c0_16] : memref<1x128xf32, #tpu.memory_space<vmem>>, vector<1x128xf32>
    %20 = vector.broadcast %19 : vector<1x128xf32> to vector<8x128xf32>
    %21 = arith.addf %18, %20 : vector<8x128xf32>
    %c0_17 = arith.constant 0 : index
    %c0_18 = arith.constant 0 : index
    %22 = vector.load %arg8[%c0_17, %c0_18] : memref<8x128xf32, #tpu.memory_space<vmem>>, vector<8x128xf32>
    tpu.vector_store %arg8[%c0_17, %c0_18], %21 {strides = array<i32>} : memref<8x128xf32, #tpu.memory_space<vmem>>, vector<8x128xf32>,
    return
  }
  func.func @transform_0(%arg0: i32) -> (i32, i32) {
    %c0_i32 = arith.constant 0 : i32
    %c0_i32_0 = arith.constant 0 : i32
    return %arg0, %c0_i32 : i32, i32
  }
  func.func @transform_1(%arg0: i32) -> (i32, i32) {
    %c0_i32 = arith.constant 0 : i32
    %c0_i32_0 = arith.constant 0 : i32
    %c0_i32_1 = arith.constant 0 : i32
    return %c0_i32, %c0_i32_0 : i32, i32
  }
  func.func @transform_2(%arg0: i32) -> (i32, i32) {
    %c0_i32 = arith.constant 0 : i32
    %c0_i32_0 = arith.constant 0 : i32
    %c0_i32_1 = arith.constant 0 : i32
    return %c0_i32, %c0_i32_0 : i32, i32
  }
  func.func @transform_3(%arg0: i32) -> (i32, i32) {
    %c0_i32 = arith.constant 0 : i32
    %c0_i32_0 = arith.constant 0 : i32
    %c0_i32_1 = arith.constant 0 : i32
    return %c0_i32, %c0_i32_0 : i32, i32
  }
  func.func @transform_4(%arg0: i32) -> (i32, i32) {
    %c0_i32 = arith.constant 0 : i32
    %c0_i32_0 = arith.constant 0 : i32
    %c0_i32_1 = arith.constant 0 : i32
    return %c0_i32, %c0_i32_0 : i32, i32
  }
  func.func @transform_5(%arg0: i32) -> (i32, i32) {
    %c0_i32 = arith.constant 0 : i32
    %c0_i32_0 = arith.constant 0 : i32
    %c0_i32_1 = arith.constant 0 : i32
    return %c0_i32, %c0_i32_0 : i32, i32
  }
  func.func @transform_6(%arg0: i32) -> (i32, i32) {
    %c0_i32 = arith.constant 0 : i32
    %c0_i32_0 = arith.constant 0 : i32
    %c0_i32_1 = arith.constant 0 : i32
    return %c0_i32, %c0_i32_0 : i32, i32
  }
  func.func @transform_7(%arg0: i32) -> (i32, i32) {
    %c0_i32 = arith.constant 0 : i32
    %c0_i32_0 = arith.constant 0 : i32
    return %arg0, %c0_i32 : i32, i32
  }
}

</mosaic_0001>

<bundles_post_ra>
// kernel: tpu_custom_call.1
= control target key start
LH: loop header
LB: loop body
LE: loop exit
PB: predicated region body
PF: predicated region fallthrough
CT: control target
= control target key end

     0   :  { %12 = vsyncpa [#allocation3], 0  ;;  %s556_s0 = inlined_call_operand.hbm [shape: bf16[8,32], index: 0, kind: input, shape index: {}]   ;;  %s557_s1 = inlined_call_operand.hbm [shape: bf16[32,32], index: 1, kind: input, shape index: {}]   ;;  %s558_s2 = inlined_call_operand.vmem [shape: f32[1,32], index: 2, kind: input, shape index: {}]   ;;  %s559_s3 = inlined_call_operand.hbm [shape: bf16[32,32], index: 3, kind: input, shape index: {}]   ;;  %s560_s4 = inlined_call_operand.vmem [shape: f32[1,32], index: 4, kind: input, shape index: {}]   ;;  %s561_s5 = inlined_call_operand.hbm [shape: bf16[32,128], index: 5, kind: input, shape index: {}]   ;;  %s562_s6 = inlined_call_operand.vmem [shape: f32[1,128], index: 6, kind: input, shape index: {}]   ;;  %s563_s7 = inlined_call_operand.hbm [shape: f32[8,128], index: 7, kind: output, shape index: {}]  }
   0x1   :  { %13 = vsyncpa [#allocation6], 0 }
   0x2   :  { %14 = vsyncpa [#allocation9], 0 }
   0x3   :  { %15 = vsyncpa [#allocation4], 0  ;;  %s471_s24 = smov [#allocation5]  }
   0x4   :  { %s31_s25 = sshll.u32 %s471_s24, 4  ;;  %s32_s25 = int_to_ptr.vmem [resolvable:$true] %s31_s25 }
   0x5   :  { %s371_s26 = scalar_lea.vmem %s32_s25, 256  ;;  %p376_p1 = scmp.lt.s32.totalorder %s32_s25, %s32_s25 }
   0x6   :  { %p372_p0 = scmp.ne.s32.totalorder %s32_s25, %s371_s26  ;;  %p377_p2 = scmp.lt.s32.totalorder %s371_s26, %s371_s26 }
   0x8   :  { %p378_p3 = por %p377_p2, %p376_p1 }
   0xa   :  { %p379_p4 = pnand %p378_p3, %p372_p0 }
   0xc   :  { %382 = shalt.err (!%p379_p4)
}
   0xd   :  { %s472_s27 = smov 64   ;;  %s473_s28 = smov 4  }
   0xe   :  { %37 = dma.hbm_to_vmem [thread:$0]  %s557_s1, 256, %s32_s25, [#allocation6], %s472_s27, %s472_s27, %s473_s28  }
   0xf   :  { %s474_s8 = smov [#allocation2]   ;;  %s475_s10 = smov [#allocation7]  }
  0x10   :  { %s22_s9 = sshll.u32 %s474_s8, 4  ;;  %s45_s11 = sshll.u32 %s475_s10, 4  ;;  %s23_s9 = int_to_ptr.vmem [resolvable:$true] %s22_s9  ;;  %s46_s11 = int_to_ptr.vmem [resolvable:$true] %s45_s11 }
  0x11   :  { %s391_s12 = scalar_lea.vmem %s23_s9, 64  ;;  %p396_p6 = scmp.lt.s32.totalorder %s23_s9, %s23_s9 }
  0x12   :  { %p392_p5 = scmp.ne.s32.totalorder %s23_s9, %s391_s12  ;;  %p397_p7 = scmp.lt.s32.totalorder %s391_s12, %s391_s12 }
  0x14   :  { %p398_p8 = por %p397_p7, %p396_p6 }
  0x16   :  { %p399_p9 = pnand %p398_p8, %p392_p5 }
  0x18   :  { %402 = shalt.err (!%p399_p9)
}
  0x19   :  { %25 = dma.hbm_to_vmem [thread:$0]  %s556_s0, 64, %s23_s9, [#allocation3]  }
  0x1a   :  { %s411_s15 = scalar_lea.vmem %s46_s11, 256  ;;  %p416_p11 = scmp.lt.s32.totalorder %s46_s11, %s46_s11 }
  0x1b   :  { %p412_p10 = scmp.ne.s32.totalorder %s46_s11, %s411_s15  ;;  %p417_p12 = scmp.lt.s32.totalorder %s411_s15, %s411_s15 }
  0x1d   :  { %p418_p13 = por %p417_p12, %p416_p11 }
  0x1f   :  { %p419_p0 = pnand %p418_p13, %p412_p10 }
  0x21   :  { %422 = shalt.err (!%p419_p0)
}
  0x22   :  { %51 = dma.hbm_to_vmem [thread:$0]  %s559_s3, 256, %s46_s11, [#allocation6], %s472_s27, %s472_s27, %s473_s28  }
  0x23   :  { %s476_s17 = smov [#allocation8]  }
  0x24   :  { %s59_s18 = sshll.u32 %s476_s17, 4  ;;  %s60_s18 = int_to_ptr.vmem [resolvable:$true] %s59_s18 }
  0x25   :  { %s431_s19 = scalar_lea.vmem %s60_s18, 256  ;;  %p436_p2 = scmp.lt.s32.totalorder %s60_s18, %s60_s18 }
  0x26   :  { %p432_p1 = scmp.ne.s32.totalorder %s60_s18, %s431_s19  ;;  %p437_p3 = scmp.lt.s32.totalorder %s431_s19, %s431_s19 }
  0x28   :  { %p438_p4 = por %p437_p3, %p436_p2 }
  0x2a   :  { %p439_p5 = pnand %p438_p4, %p432_p1 }
  0x2c   :  { %442 = shalt.err (!%p439_p5)
}
  0x2d   :  { %65 = dma.hbm_to_vmem [thread:$0]  %s561_s5, 256, %s60_s18, [#allocation9], %s472_s27, %s472_s27, %s473_s28  }
  0x2e   :  { %463 = dma.done.wait [#allocation3], 64  }
  0x2f   :  { %464 = vsyncadd [#allocation3], 4294967232 }
  0x30   :  { %465 = dma.done.wait [#allocation6], 512  }
  0x31   :  { %466 = vsyncadd [#allocation6], 4294966784 }
  0x32   :  { %467 = dma.done.wait [#allocation9], 256  }
  0x33   :  { %468 = vsyncadd [#allocation9], 4294967040  ;;  %v477_v0 = vmov 0.0   ;;  %vm478_vm0 = vmmov 0   ;;  %v357_v1 = vld [vmem:[#allocation5 + $0x8] sm:$0xff]   ;;  %v358_v2 = vld [vmem:[#allocation5] sm:$0xff]  }
  0x34   :  { %324 = vmatprep.subr.bf16.mxu0 %v477_v0  ;;  %328 = vmatprep.mubr.msk.bf16.mxu0 %vm478_vm0, %v477_v0  ;;  %v81_v3 = vld [vmem:[#allocation2] sm:$0xf]  ;;  %vm105_vm1 = vcmask 261120   ;;  %v360_v5 = vld [vmem:[#allocation7] sm:$0xff]   ;;  %v361_v6 = vld [vmem:[#allocation8 + $0x8] sm:$0xff]   ;;  %s479_s24 = smov [#allocation10]  }
  0x35   :  { %332 = vmatprep.subr.bf16.mxu1 %v477_v0  ;;  %336 = vmatprep.mubr.msk.bf16.mxu1 %vm478_vm0, %v477_v0  ;;  %v359_v4 = vld [vmem:[#allocation7 + $0x8] sm:$0xff]   ;;  %v362_v15 = vld [vmem:[#allocation8] sm:$0xff]   ;;  %s292_s25 = sshll.u32 %s479_s24, 4  ;;  %s293_s25 = int_to_ptr.vmem [resolvable:$true] %s292_s25 }
  0x36   :  { %325 = vmatpush3.bf16.msra.mxu0 %v357_v1  ;;  %333 = vmatpush3.bf16.msra.mxu1 %v359_v4  ;;  %v303_v7 = vld [vmem:[%s558_s2] ss:$0 sm:$0xff]  ;;  %p448_p7 = scmp.lt.s32.totalorder %s293_s25, %s293_s25 }
  0x37   :  { %326 = vmatprep.subr.bf16.mxu0 %v477_v0  ;;  %334 = vmatprep.subr.bf16.mxu1 %v477_v0  ;;  %v307_v16 = vld [vmem:[%s560_s4] ss:$0 sm:$0xff]  ;;  %s443_s4 = scalar_lea.vmem %s293_s25, 128 }
  0x38   :  { %v311_v24 = vld [vmem:[%s562_s6] ss:$0 sm:$0xff]  ;;  %p444_p6 = scmp.ne.s32.totalorder %s293_s25, %s443_s4  ;;  %p449_p8 = scmp.lt.s32.totalorder %s443_s4, %s443_s4 }
  0x3a   :  { %327 = vmatpush3.bf16.msra.mxu0 %v358_v2  ;;  %335 = vmatpush3.bf16.msra.mxu1 %v360_v5  ;;  %p450_p9 = por %p449_p8, %p448_p7 }
  0x3b   :  { %340 = vmatprep.subr.bf16.mxu0 %v477_v0 }
  0x3c   :  { %p451_p10 = pnand %p450_p9, %p444_p6 }
  0x3d   :  { %329 = vmatmul.mubr.msk.bf16.vlgmr.msra.gmra.mxu0 %vm105_vm1, %v81_v3 }
  0x3e   :  { %344 = vmatprep.mubr.msk.bf16.mxu0 %vm478_vm0, %v477_v0  ;;  %341 = vmatpush3.bf16.msra.mxu0 %v361_v6 }
  0x3f   :  { %342 = vmatprep.subr.bf16.mxu0 %v477_v0 }
  0x42   :  { %343 = vmatpush3.bf16.msra.mxu0 %v362_v15 }
  0xfd   :  { %v143_v8 = vpop.f32.mrf.mxu0 }
  0xfe   :  { %v144_v9 = vadd.f32 %v303_v7, %v143_v8 }
  0xff   :  { %v330_v10 = vpop.f32.mrf.mxu0 }
 0x100   :  { %v149_v11 = vmax.f32 %v144_v9, 0.0 }
 0x101   :  { %v146_v12 = vpop.f32.mrf.mxu0 }
 0x102   :  { %v150_v13 = vpack.c.bf16 %v149_v11, %v149_v11 }
 0x103   :  { %v331_v14 = vpop.f32.mrf.mxu0 }
 0x104   :  { %337 = vmatmul.mubr.msk.bf16.vlgmr.msra.gmra.mxu1 %vm105_vm1, %v150_v13 }
 0x1c4   :  { %v211_v17 = vpop.f32.mrf.mxu1 }
 0x1c5   :  { %v212_v18 = vadd.f32 %v307_v16, %v211_v17 }
 0x1c6   :  { %v338_v19 = vpop.f32.mrf.mxu1 }
 0x1c7   :  { %v217_v20 = vmax.f32 %v212_v18, 0.0 }
 0x1c8   :  { %v214_v21 = vpop.f32.mrf.mxu1 }
 0x1c9   :  { %v218_v22 = vpack.c.bf16 %v217_v20, %v217_v20 }
 0x1ca   :  { %v339_v23 = vpop.f32.mrf.mxu1 }
 0x1cb   :  { %345 = vmatmul.mubr.msk.bf16.vlgmr.msra.gmra.mxu0 %vm105_vm1, %v218_v22 }
 0x28b   :  { %v279_v25 = vpop.f32.mrf.mxu0 }
 0x28c   :  { %v280_v26 = vadd.f32 %v311_v24, %v279_v25 }
 0x28d   :  { %v346_v27 = vpop.f32.mrf.mxu0 }
 0x28e   :  { %285 = vst [vmem:[#allocation10] sm:$0xff] %v280_v26 }
 0x28f   :  { %v282_v28 = vpop.f32.mrf.mxu0 }
 0x290   :  { %454 = shalt.err (!%p451_p10)
}
 0x291   :  { %295 = dma.vmem_to_hbm [thread:$0]  %s293_s25, 128, %s563_s7, [#allocation4]   ;;  %v347_v29 = vpop.f32.mrf.mxu0 }
 0x292   :  { %469 = dma.done.wait [#allocation4], 128  }
 0x293   :  { %470 = vsyncadd [#allocation4], 4294967168 }
 0x294   :  { %299 = vsyncpa [#allocation3], 1 }
 0x295   :  { %300 = vsyncpa [#allocation6], 1 }
 0x296   :  { %301 = vsyncpa [#allocation9], 1 }
 0x297   :  { %302 = vsyncpa [#allocation4], 1 }

</bundles_post_ra>
